<compile_context>
chip_gen: v7x
topology: tpu7x:2x2x1
jax: 0.10.0
libtpu: 0.0.40
codegen_flags: <defaults>
</compile_context>

<pallas_src>
import functools

import jax
import jax.numpy as jnp
from jax.experimental import pallas as pl
from jax.experimental.pallas import tpu as pltpu


def _round_up(a, b):
    return (a + b - 1) // b * b


def _vmem_ceiling_bytes():
    # Physical VMEM minus headroom for Mosaic internal scratch / semaphores
    # (v7x: 64 MiB -> ~56 MiB usable; v5e/v6e: 128 MiB -> ~120 MiB).
    try:
        cap = int(pltpu.get_tpu_info().vmem_capacity_bytes)
    except Exception:
        cap = 64 << 20  # conservative (v7x-sized) fallback
    return max(cap - (8 << 20), 16 << 20)


def _tile_footprint_bytes(tm, tn, H, out_itemsize):
    return (
        2 * tm * H * 2            # x row tile (bf16), double-buffered
        + H * H * 2               # W1 (bf16), single-buffered (Buffered(1))
        + H * 4                   # b1 (f32), single-buffered (Buffered(1))
        + 2 * H * tn * 2          # W2 column tile (bf16), double-buffered
        + 2 * tn * 4              # b2 tile (f32), double-buffered
        + 2 * tm * tn * out_itemsize  # output tile, double-buffered
        + tm * H * 2              # h scratch (bf16)
    )


def _cls_head_kernel(x_ref, w1_ref, b1_ref, w2_ref, b2_ref, o_ref, h_ref):
    # Grid: (row tile i, vocab tile j); j is the inner ("arbitrary") axis.
    # x_ref:  (tm, H)  bf16    w1_ref: (H, H)  bf16    b1_ref: (1, H)  f32
    # w2_ref: (H, tn)  bf16    b2_ref: (1, tn) f32
    # o_ref:  (tm, tn) out     h_ref:  (tm, H) bf16 scratch (persists over j)

    @pl.when(pl.program_id(1) == 0)
    def _():
        h = jnp.dot(x_ref[...], w1_ref[...],
                    preferred_element_type=jnp.float32)
        h = jnp.maximum(h + b1_ref[...], 0.0)      # bias + ReLU in fp32
        # NOTE: h is re-quantized to bf16 before the second GEMM (second
        # rounding on activations) -- acceptable at bf16-level tolerance.
        h_ref[...] = h.astype(h_ref.dtype)

    out = jnp.dot(h_ref[...], w2_ref[...],
                  preferred_element_type=jnp.float32)
    o_ref[...] = (out + b2_ref[...]).astype(o_ref.dtype)


def prepare_cls_head_params(w1, b1, w2, b2, *, block_cols=None):
    """One-time weight preparation: bf16 cast + vocab padding to a tn multiple.

    Do this once (not per forward call) so W2 is not re-read/re-written in HBM
    on every invocation just for the cast/pad.
    Returns ((w1b, b1_2, w2b, b2_2), V_original, tn).
    """
    H, V = w2.shape
    tn = block_cols if block_cols is not None else min(2048, _round_up(V, 128))
    tn = _round_up(tn, 128)
    V_pad = _round_up(V, tn)

    w1b = jnp.asarray(w1, jnp.bfloat16)
    w2b = jnp.asarray(w2, jnp.bfloat16)
    b2p = jnp.asarray(b2, jnp.float32)
    if V_pad != V:
        w2b = jnp.pad(w2b, ((0, 0), (0, V_pad - V)))
        b2p = jnp.pad(b2p, ((0, V_pad - V),))
    b1_2 = jnp.asarray(b1, jnp.float32).reshape(1, H)
    b2_2 = b2p.reshape(1, V_pad)
    return (w1b, b1_2, w2b, b2_2), V, tn


@functools.partial(
    jax.jit, static_argnames=("v_orig", "tn", "block_rows", "out_dtype"))
def cls_head_prepared(x, w1b, b1_2, w2b, b2_2, *, v_orig, tn,
                      block_rows=None, out_dtype=None):
    """x: (batch, seq, hidden). Weights already prepared (bf16, V padded)."""
    B, S, H = x.shape
    V_pad = w2b.shape[1]
    assert V_pad % tn == 0, (V_pad, tn)
    M = B * S
    if out_dtype is None:
        out_dtype = x.dtype
    out_isz = jnp.dtype(out_dtype).itemsize

    # ---- row tile: big by default (128-aligned when M is large) ----
    if block_rows is not None:
        tm = _round_up(block_rows, 8)
    else:
        align = 128 if M >= 256 else 8
        tm = _round_up(min(1024, M), align)
        # Keep >= 2 row tiles so the "parallel" row axis can use both v7x
        # TensorCores (the vocab axis must stay "arbitrary" for h_ref reuse).
        if _round_up(M, tm) // tm < 2 and M >= 2 * align:
            tm = _round_up((M + 1) // 2, align)

    # ---- shrink tm until the tile footprint fits under the VMEM ceiling ----
    ceiling = _vmem_ceiling_bytes()
    while tm > 8 and _tile_footprint_bytes(tm, tn, H, out_isz) * 1.25 > ceiling:
        tm = max(_round_up(tm // 2, 8), 8)

    M_pad = _round_up(M, tm)

    # ---- flatten + pad + cast activations to bf16 (fp32 accumulation) ----
    x2 = x.reshape(M, H).astype(jnp.bfloat16)
    if M_pad != M:
        x2 = jnp.pad(x2, ((0, M_pad - M), (0, 0)))

    grid = (M_pad // tm, V_pad // tn)
    row_tiles = grid[0]

    footprint = _tile_footprint_bytes(tm, tn, H, out_isz)
    vmem_limit = int(max(min(footprint * 1.3 + (4 << 20), ceiling), 16 << 20))

    cost = pl.CostEstimate(
        flops=2 * M_pad * H * H + 2 * M_pad * H * V_pad,
        transcendentals=0,
        bytes_accessed=int(
            M_pad * H * 2                      # x read (bf16)
            + H * H * 2 + H * 4                # W1 + b1 (read once)
            + row_tiles * (H * V_pad * 2       # W2 re-streamed per row tile
                           + V_pad * 4)        # b2 re-streamed per row tile
            + M_pad * V_pad * out_isz),        # logits writeback
    )

    out2 = pl.pallas_call(
        _cls_head_kernel,
        out_shape=jax.ShapeDtypeStruct((M_pad, V_pad), out_dtype),
        grid_spec=pltpu.PrefetchScalarGridSpec(
            num_scalar_prefetch=0,
            grid=grid,
            in_specs=[
                pl.BlockSpec((tm, H), lambda i, j: (i, 0)),      # x row tile
                pl.BlockSpec((H, H), lambda i, j: (0, 0),
                             pipeline_mode=pl.Buffered(1)),      # W1 (const)
                pl.BlockSpec((1, H), lambda i, j: (0, 0),
                             pipeline_mode=pl.Buffered(1)),      # b1 (const)
                pl.BlockSpec((H, tn), lambda i, j: (0, j)),      # W2 col tile
                pl.BlockSpec((1, tn), lambda i, j: (0, j)),      # b2 tile
            ],
            out_specs=pl.BlockSpec((tm, tn), lambda i, j: (i, j)),
            scratch_shapes=[pltpu.VMEM((tm, H), jnp.bfloat16)],
        ),
        compiler_params=pltpu.CompilerParams(
            dimension_semantics=("parallel", "arbitrary"),
            vmem_limit_bytes=vmem_limit,
        ),
        cost_estimate=cost,
    )(x2, w1b, b1_2, w2b, b2_2)

    return out2[:M, :v_orig].reshape(B, S, v_orig)


def cls_head(x, w1, b1, w2, b2, *, block_rows=None, block_cols=None,
             out_dtype=None):
    """One-shot convenience wrapper (prepare + call).

    For repeated calls (training / serving loops), call
    prepare_cls_head_params() ONCE and reuse the result with
    cls_head_prepared(), so the W2 cast/pad is not redone every step.
    Weights are stored transposed vs torch nn.Linear: w1 (H, H), w2 (H, V).
    """
    (w1b, b1_2, w2b, b2_2), v_orig, tn = prepare_cls_head_params(
        w1, b1, w2, b2, block_cols=block_cols)
    return cls_head_prepared(x, w1b, b1_2, w2b, b2_2, v_orig=v_orig, tn=tn,
                             block_rows=block_rows, out_dtype=out_dtype)


def reference_fp32(x, w1, b1, w2, b2):
    h = jnp.maximum(jnp.einsum("bsh,hk->bsk", x, w1) + b1, 0.0)
    return jnp.einsum("bsh,hv->bsv", h, w2) + b2


if __name__ == "__main__":
    # Small BERT-ish config: batch=2, seq=8, hidden=32, voc_size=64.
    B, S, H, V = 2, 8, 32, 64

    key = jax.random.PRNGKey(0)
    kx, k1, kb1, k2, kb2 = jax.random.split(key, 5)

    x = jax.random.normal(kx, (B, S, H), dtype=jnp.float32)
    # nn.Linear(H, H): torch weight (H, H); stored transposed (in, out).
    w1 = jax.random.normal(k1, (H, H), dtype=jnp.float32) * 0.05
    b1 = jax.random.normal(kb1, (H,), dtype=jnp.float32) * 0.05
    # nn.Linear(H, V): torch weight (V, H); stored transposed as (H, V).
    w2 = jax.random.normal(k2, (H, V), dtype=jnp.float32) * 0.05
    b2 = jax.random.normal(kb2, (V,), dtype=jnp.float32) * 0.05

    # Prepare weights once (hoisted cast/pad), then run the kernel.
    params, v_orig, tn = prepare_cls_head_params(w1, b1, w2, b2)
    out = cls_head_prepared(x, *params, v_orig=v_orig, tn=tn)
    out = jax.block_until_ready(out)

    ref = reference_fp32(x, w1, b1, w2, b2)
    assert out.shape == (B, S, V), out.shape
    # Matmul operands are bf16 (fp32 accumulation), so compare against the
    # fp32 reference with a bf16-appropriate tolerance.
    max_err = float(jnp.max(jnp.abs(out - ref)))
    assert jnp.allclose(out, ref, atol=2e-2, rtol=2e-2), max_err

    print("KERNEL_OK")
</pallas_src>

<mosaic_0001>
module attributes {stable_mosaic.version = 11 : i64} {
  func.func @_cls_head_kernel(%arg0: i32, %arg1: i32, %arg2: memref<8x32xbf16, #tpu.memory_space<vmem>>, %arg3: memref<32x32xbf16, #tpu.memory_space<vmem>>, %arg4: memref<1x32xf32, #tpu.memory_space<vmem>>, %arg5: memref<32x128xbf16, #tpu.memory_space<vmem>>, %arg6: memref<1x128xf32, #tpu.memory_space<vmem>>, %arg7: memref<8x128xf32, #tpu.memory_space<vmem>>, %arg8: memref<8x32xbf16, #tpu.memory_space<vmem>>) attributes {dimension_semantics = [#tpu.dimension_semantics<parallel>, #tpu.dimension_semantics<arbitrary>], iteration_bounds = array<i64: 2, 1>, scalar_prefetch = 0 : i64, scratch_operands = 1 : i64, tpu.core_type = #tpu.core_type<tc>, window_params = [{transform_indices = @transform_0, window_bounds = array<i64: 8, 32>}, {pipeline_mode = #tpu.pipeline_mode<synchronous>, transform_indices = @transform_1, window_bounds = array<i64: 32, 32>}, {pipeline_mode = #tpu.pipeline_mode<synchronous>, transform_indices = @transform_2, window_bounds = array<i64: 1, 32>}, {transform_indices = @transform_3, window_bounds = array<i64: 32, 128>}, {transform_indices = @transform_4, window_bounds = array<i64: 1, 128>}, {transform_indices = @transform_5, window_bounds = array<i64: 8, 128>}]} {
    %c0_i32 = arith.constant 0 : i32
    %0 = arith.cmpi eq, %arg1, %c0_i32 : i32
    %1 = arith.extui %0 : i1 to i32
    %c0_i32_0 = arith.constant 0 : i32
    %2 = arith.cmpi ne, %1, %c0_i32_0 : i32
    scf.if %2 {
      %c0_8 = arith.constant 0 : index
      %c0_9 = arith.constant 0 : index
      %10 = vector.load %arg2[%c0_8, %c0_9] : memref<8x32xbf16, #tpu.memory_space<vmem>>, vector<8x32xbf16>
      %c0_10 = arith.constant 0 : index
      %c0_11 = arith.constant 0 : index
      %11 = vector.load %arg3[%c0_10, %c0_11] : memref<32x32xbf16, #tpu.memory_space<vmem>>, vector<32x32xbf16>
      %cst_12 = arith.constant dense<0.000000e+00> : vector<8x32xf32>
      %12 = tpu.matmul %10, %11, %cst_12 {dimension_numbers = #tpu.dot_dimension_numbers<[1], [0], [0], [1], [0, 0, 1, 1], [], []>} : vector<8x32xbf16>, vector<32x32xbf16>, vector<8x32xf32> -> vector<8x32xf32>
      %c0_13 = arith.constant 0 : index
      %c0_14 = arith.constant 0 : index
      %13 = vector.load %arg4[%c0_13, %c0_14] : memref<1x32xf32, #tpu.memory_space<vmem>>, vector<1x32xf32>
      %14 = vector.broadcast %13 : vector<1x32xf32> to vector<8x32xf32>
      %15 = arith.addf %12, %14 : vector<8x32xf32>
      %cst_15 = arith.constant 0.000000e+00 : f32
      %16 = vector.broadcast %cst_15 : f32 to vector<8x32xf32>
      %17 = arith.maximumf %15, %16 : vector<8x32xf32>
      %18 = arith.truncf %17 : vector<8x32xf32> to vector<8x32xbf16>
      %c0_16 = arith.constant 0 : index
      %c0_17 = arith.constant 0 : index
      %19 = vector.load %arg8[%c0_16, %c0_17] : memref<8x32xbf16, #tpu.memory_space<vmem>>, vector<8x32xbf16>
      tpu.vector_store %arg8[%c0_16, %c0_17], %18 {strides = array<i32>} : memref<8x32xbf16, #tpu.memory_space<vmem>>, vector<8x32xbf16>,
    } else {
    }
    %c0 = arith.constant 0 : index
    %c0_1 = arith.constant 0 : index
    %3 = vector.load %arg8[%c0, %c0_1] : memref<8x32xbf16, #tpu.memory_space<vmem>>, vector<8x32xbf16>
    %c0_2 = arith.constant 0 : index
    %c0_3 = arith.constant 0 : index
    %4 = vector.load %arg5[%c0_2, %c0_3] : memref<32x128xbf16, #tpu.memory_space<vmem>>, vector<32x128xbf16>
    %cst = arith.constant dense<0.000000e+00> : vector<8x128xf32>
    %5 = tpu.matmul %3, %4, %cst {dimension_numbers = #tpu.dot_dimension_numbers<[1], [0], [0], [1], [0, 0, 1, 1], [], []>} : vector<8x32xbf16>, vector<32x128xbf16>, vector<8x128xf32> -> vector<8x128xf32>
    %c0_4 = arith.constant 0 : index
    %c0_5 = arith.constant 0 : index
    %6 = vector.load %arg6[%c0_4, %c0_5] : memref<1x128xf32, #tpu.memory_space<vmem>>, vector<1x128xf32>
    %7 = vector.broadcast %6 : vector<1x128xf32> to vector<8x128xf32>
    %8 = arith.addf %5, %7 : vector<8x128xf32>
    %c0_6 = arith.constant 0 : index
    %c0_7 = arith.constant 0 : index
    %9 = vector.load %arg7[%c0_6, %c0_7] : memref<8x128xf32, #tpu.memory_space<vmem>>, vector<8x128xf32>
    tpu.vector_store %arg7[%c0_6, %c0_7], %8 {strides = array<i32>} : memref<8x128xf32, #tpu.memory_space<vmem>>, vector<8x128xf32>,
    return
  }
  func.func @transform_0(%arg0: i32, %arg1: i32) -> (i32, i32) {
    %c0_i32 = arith.constant 0 : i32
    %c0_i32_0 = arith.constant 0 : i32
    return %arg0, %c0_i32 : i32, i32
  }
  func.func @transform_1(%arg0: i32, %arg1: i32) -> (i32, i32) {
    %c0_i32 = arith.constant 0 : i32
    %c0_i32_0 = arith.constant 0 : i32
    %c0_i32_1 = arith.constant 0 : i32
    return %c0_i32, %c0_i32_0 : i32, i32
  }
  func.func @transform_2(%arg0: i32, %arg1: i32) -> (i32, i32) {
    %c0_i32 = arith.constant 0 : i32
    %c0_i32_0 = arith.constant 0 : i32
    %c0_i32_1 = arith.constant 0 : i32
    return %c0_i32, %c0_i32_0 : i32, i32
  }
  func.func @transform_3(%arg0: i32, %arg1: i32) -> (i32, i32) {
    %c0_i32 = arith.constant 0 : i32
    %c0_i32_0 = arith.constant 0 : i32
    return %c0_i32, %arg1 : i32, i32
  }
  func.func @transform_4(%arg0: i32, %arg1: i32) -> (i32, i32) {
    %c0_i32 = arith.constant 0 : i32
    %c0_i32_0 = arith.constant 0 : i32
    return %c0_i32, %arg1 : i32, i32
  }
  func.func @transform_5(%arg0: i32, %arg1: i32) -> (i32, i32) {
    %c0_i32 = arith.constant 0 : i32
    return %arg0, %arg1 : i32, i32
  }
}

</mosaic_0001>

<bundles_post_ra>
// kernel: cls_head_prepared.1
= control target key start
LH: loop header
LB: loop body
LE: loop exit
PB: predicated region body
PF: predicated region fallthrough
CT: control target
= control target key end

     0   :  { %s643_s18 = smov 0   ;;  %s645_s19 = smov 0   ;;  %s696_s0 = inlined_call_operand.vmem [shape: bf16[16,32], index: 0, kind: input, shape index: {}]   ;;  %s697_s1 = inlined_call_operand.vmem [shape: bf16[32,32], index: 1, kind: input, shape index: {}]   ;;  %s698_s2 = inlined_call_operand.vmem [shape: f32[1,32], index: 2, kind: input, shape index: {}]   ;;  %s699_s3 = inlined_call_operand.vmem [shape: bf16[32,128], index: 3, kind: input, shape index: {}]   ;;  %s700_s4 = inlined_call_operand.vmem [shape: f32[1,128], index: 4, kind: input, shape index: {}]   ;;  %s701_s5 = inlined_call_operand.vmem [shape: f32[16,128], index: 5, kind: output, shape index: {}]  }
   0x1   :  { %s647_s20 = smov 0  }
   0x2 LB: > { %s27_s21 = sadd.s32 1, %s605_s19  ;;  %p522_p0 = scmp.ge.s32.totalorder %s609_s20, 1  ;;  %s609_s20 = sphi %s647_s20, %s15_s20   ;;  %s605_s19 = sphi %s645_s19, %s703_s19   ;;  %s601_s18 = sphi %s643_s18, %s702_s18  }
   0x3   : > { %p29_p1 = scmp.ge.s32.totalorder %s27_s21, 2  ;;  %p217_p2 = scmp.lt.s32.totalorder %s609_s20, 3 }
   0x5   : > { %s705_s21 = smov (%p29_p1, %s27_s21), 0  ;;  %p218_p3 = pnand %p522_p0, %p217_p2 }
   0x6   : > { %v583_v0 = vld [vmem:[%s697_s1] sm:$0xff] (!%p218_p3)   ;;  %v611_v1 = vmov (!%p218_p3), 0.0   ;;  %v584_v2 = vld [vmem:[%s697_s1 + $0x8] sm:$0xff] (!%p218_p3)   ;;  %vm612_vm0 = vmmov (!%p218_p3), 0   ;;  %p253_p4 = scmp.lt.s32.totalorder (!%p218_p3), %s601_s18, 1  ;;  %vm300_vm1 = vcmask (!%p218_p3), 261120  }
   0x7   : > { %221 = sbr.rel (%p218_p3) target bundleno = 459 (0x1cb), region = 40  ;;  %541 = vmatprep.subr.bf16.mxu0 (!%p218_p3), %v611_v1  ;;  %549 = vmatprep.subr.bf16.mxu1 (!%p218_p3), %v611_v1  ;;  %v585_v4 = vld [vmem:[%s699_s3] sm:$0xff] (!%p218_p3)   ;;  %v586_v5 = vld [vmem:[%s699_s3 + $0x8] sm:$0xff] (!%p218_p3)   ;;  %vm346_vm2 = vcmask (!%p218_p3), 257024  }
   0x8   : > { %542 = vmatpush3.bf16.msra.mxu0 (!%p218_p3), %v583_v0  ;;  %545 = vmatprep.mubr.msk.bf16.mxu0 (!%p218_p3), %vm612_vm0, %v611_v1  ;;  %v525_v6 = vld [vmem:[%s698_s2] ss:$0 sm:$0xff] (!%p218_p3) }
   0x9   : > { %543 = vmatprep.subr.bf16.mxu0 (!%p218_p3), %v611_v1  ;;  %553 = vmatprep.mubr.msk.bf16.mxu1 (!%p218_p3), %vm612_vm0, %v611_v1  ;;  %v529_v15 = vld [vmem:[%s700_s4] ss:$0 sm:$0xff] (!%p218_p3) }
   0xa   : > { %550 = vmatpush3.bf16.msra.mxu1 (!%p218_p3), %v585_v4 }
   0xb   : > { %551 = vmatprep.subr.bf16.mxu1 (!%p218_p3), %v611_v1 }
   0xc   : > { %544 = vmatpush3.bf16.msra.mxu0 (!%p218_p3), %v584_v2 }
   0xe   : > { %s707_s18 = smov (!%p253_p4, %s601_s18), 1  ;;  %552 = vmatpush3.bf16.msra.mxu1 %v586_v5 }
   0xf   : > { %s523_s26 = sshll.u32 %s707_s18, 2  ;;  %s524_s11 = sshll.u32 %s707_s18, 3 }
  0x10   : > { %s256_s29 = scalar_lea.vmem %s696_s0, %s523_s26  ;;  %s270_s16 = scalar_lea.vmem %s701_s5, %s524_s11 }
  0x11   : > { %v276_v3 = vld [vmem:[%s256_s29] sm:$0xf] }
  0x12   : > { %546 = vmatmul.mubr.msk.bf16.vlgmr.msra.gmra.mrb[0].mxu0 %vm300_vm1, %v276_v3 }
  0xe5   : > { %v338_v7 = vpop.f32.mrb[0].mxu0 }
  0xe6   : > { %v339_v8 = vadd.f32 %v525_v6, %v338_v7  ;;  %v547_v9 = vpop.f32.mrb[1].mxu0 }
  0xe7   : > { %v341_v10 = vpop.f32.mrb[2].mxu0 }
  0xe8   : > { %v344_v11 = vmax.f32 %v339_v8, 0.0  ;;  %v548_v12 = vpop.f32.mrb[3].mxu0 }
  0xea   : > { %v345_v13 = vpack.c.bf16 %v344_v11, %v344_v11 }
  0xec   : > { %347 = vst.msk [vmem:[#allocation2] sm:$0xf] %vm346_vm2, %v345_v13 }
  0xf3   : > { %v348_v14 = vld [vmem:[#allocation2] sm:$0xf] }
  0xf4   : > { %554 = vmatmul.mubr.msk.bf16.vlgmr.msra.gmra.mrb[0].mxu1 %vm300_vm1, %v348_v14 }
 0x1c7   : > { %v410_v16 = vpop.f32.mrb[0].mxu1 }
 0x1c8   : > { %v411_v17 = vadd.f32 %v529_v15, %v410_v16  ;;  %v555_v18 = vpop.f32.mrb[1].mxu1 }
 0x1c9   : > { %v413_v19 = vpop.f32.mrb[2].mxu1 }
 0x1ca   : > { %416 = vst [vmem:[%s270_s16] sm:$0xff] %v411_v17  ;;  %v556_v20 = vpop.f32.mrb[3].mxu1 }
 0x1cb PF: > { %s15_s20 = sadd.s32 1, %s609_s20   ;;  %s702_s18 = smov %s605_s19 }
 0x1cc   : > { %p12_p5 = scmp.ge.s32.totalorder %s15_s20, 4   ;;  %s703_s19 = smov %s705_s21 }
 0x1ce   :  { %14 = sbr.rel (!%p12_p5) target bundleno = 2 (0x2), region = 80 }

</bundles_post_ra>
